<compile_context>
chip_gen: v5e
topology: v5e:2x2
jax: 0.10.0
libtpu: 0.0.40
codegen_flags: <defaults>
</compile_context>

<pallas_src>
import functools

import jax
import jax.numpy as jnp
import numpy as np
from jax.experimental import pallas as pl
from jax.experimental.pallas import tpu as pltpu


def _bottleneck_kernel(x_ref, halo_ref, w1_ref, b1_ref, w2_ref, b2_ref,
                       w3_ref, b3_ref, *rest, use_downsample):
    if use_downsample:
        wd_ref, bd_ref, o_ref = rest
    else:
        (o_ref,) = rest

    t = pl.program_id(1)
    last = pl.num_programs(1) - 1

    xb = x_ref[0].astype(jnp.bfloat16)          # (Cin, TL)  cast in-kernel
    halo = halo_ref[0, 0]                       # (Cin, 2)   [left col | right col]
    tl = xb.shape[1]

    # Assemble the 1-column-halo'd tile in registers (no HBM copy of x).
    x_full = jnp.concatenate([halo[:, 0:1], xb, halo[:, 1:2]], axis=1)  # (Cin, TL+2)

    # conv1 (1x1, BN scale folded) + shift + ReLU over the halo'd columns.
    h = jnp.dot(w1_ref[...], x_full, preferred_element_type=jnp.float32)
    h = jnp.maximum(h + b1_ref[...], 0.0)       # (Cmid, TL+2) f32

    # conv2's zero padding applies to h (its input), not x: the halo columns
    # that fall outside the global sequence must be zero (relu(b1) != 0).
    # Only the two edge columns are touched -- no full-tile mask.
    h_l = jnp.where(t > 0, h[:, 0:1], 0.0)
    h_r = jnp.where(t < last, h[:, tl + 1:tl + 2], 0.0)
    h = jnp.concatenate([h_l, h[:, 1:tl + 1], h_r], axis=1).astype(jnp.bfloat16)

    # conv2 (k=3, BN folded): stack the 3 taps on the contraction axis and do
    # a single K = 3*Cmid matmul (Cmid padded to a multiple of 16 -> aligned).
    taps = jnp.concatenate(
        [h[:, 0:tl], h[:, 1:tl + 1], h[:, 2:tl + 2]], axis=0)           # (3*Cmid, TL)
    h2 = jnp.dot(w2_ref[...], taps, preferred_element_type=jnp.float32)
    h2 = jnp.maximum(h2 + b2_ref[...], 0.0).astype(jnp.bfloat16)        # (Cmid, TL)

    # conv3 (1x1, BN folded) + shift.
    h3 = jnp.dot(w3_ref[...], h2, preferred_element_type=jnp.float32)
    h3 = h3 + b3_ref[...]                                               # (Cout, TL)

    # Residual branch.
    if use_downsample:
        ident = jnp.dot(wd_ref[...], xb,
                        preferred_element_type=jnp.float32) + bd_ref[...]
    else:
        ident = xb.astype(jnp.float32)                                  # Cin == Cout

    o_ref[0] = jnp.maximum(h3 + ident, 0.0).astype(o_ref.dtype)


def _tile_halo_columns(x_ncl, tile_l):
    """Per L-tile neighbour columns: (N, nt, Cin, 2), zeros at the sequence ends.

    Tiny strided gather of 2*nt columns -- replaces the previous full
    materialization of overlapping (Cin, TL+2) windows of x.
    """
    n, c, l = x_ncl.shape
    nt = l // tile_l
    zero = jnp.zeros((n, c, 1), x_ncl.dtype)
    # left neighbour of tile t is column t*tile_l - 1 (t >= 1)
    lefts = jnp.concatenate(
        [zero, x_ncl[:, :, tile_l - 1::tile_l][:, :, :nt - 1]], axis=2)
    # right neighbour of tile t is column (t+1)*tile_l (t <= nt-2)
    rights = jnp.concatenate(
        [x_ncl[:, :, ::tile_l][:, :, 1:], zero], axis=2)
    halo = jnp.stack([lefts, rights], axis=-1)           # (N, Cin, nt, 2)
    return jnp.transpose(halo, (0, 2, 1, 3))             # (N, nt, Cin, 2)


def bottleneck_forward(x_ncl, p, *, use_downsample, tile_l=512,
                       out_dtype=jnp.bfloat16):
    """x_ncl: (N, Cin, L) float32 (PyTorch Conv1d layout). Returns (N, Cout, L).

    tile_l: L-tile per grid step (multiple of 128, divides L).  512-2048 is the
    sweet spot on v5e/v6e; on v7x (64 MiB VMEM / TC) shrink tile_l first if the
    channel widths grow large.  For large N with short L, block the batch dim
    instead of L (bigger contiguous DMAs, more grid extent for v7x's 2 TCs).
    """
    n, cin, l = x_ncl.shape
    cmid = p["w1"].shape[0]        # already padded to a multiple of 16
    cout = p["w3"].shape[0]
    tile_l = min(tile_l, l)
    assert tile_l % 128 == 0 and l % tile_l == 0, \
        "pad L to a multiple of 128 host-side"
    nt = l // tile_l

    halo = _tile_halo_columns(x_ncl, tile_l).astype(jnp.bfloat16)

    def full(shape):
        return pl.BlockSpec(shape, lambda b, t: (0,) * len(shape))

    in_specs = [
        pl.BlockSpec((1, cin, tile_l), lambda b, t: (b, 0, t)),   # x (f32, no copy)
        pl.BlockSpec((1, 1, cin, 2), lambda b, t: (b, t, 0, 0)),  # halo columns
        full((cmid, cin)), full((cmid, 1)),          # conv1 folded weight / shift
        full((cmid, 3 * cmid)), full((cmid, 1)),     # conv2 fused-tap weight / shift
        full((cout, cmid)), full((cout, 1)),         # conv3 folded weight / shift
    ]
    args = [x_ncl, halo, p["w1"], p["b1"], p["w2"], p["b2"], p["w3"], p["b3"]]
    if use_downsample:
        in_specs += [full((cout, cin)), full((cout, 1))]
        args += [p["wd"], p["bd"]]

    used = ["w1", "b1", "w2", "b2", "w3", "b3"] + (["wd", "bd"] if use_downsample else [])
    param_bytes = sum(int(p[k].size) * p[k].dtype.itemsize for k in used)
    flops = 2 * n * l * (cmid * cin + cmid * 3 * cmid + cout * cmid
                         + (cout * cin if use_downsample else 0))
    bytes_accessed = (int(x_ncl.size) * x_ncl.dtype.itemsize
                      + int(halo.size) * 2
                      + param_bytes
                      + n * cout * l * np.dtype(out_dtype).itemsize)

    kernel = functools.partial(_bottleneck_kernel, use_downsample=use_downsample)
    return pl.pallas_call(
        kernel,
        out_shape=jax.ShapeDtypeStruct((n, cout, l), out_dtype),
        grid=(n, nt),
        in_specs=in_specs,
        out_specs=pl.BlockSpec((1, cout, tile_l), lambda b, t: (b, 0, t)),
        compiler_params=pltpu.CompilerParams(
            dimension_semantics=("parallel", "parallel"),
            vmem_limit_bytes=32 * 1024 * 1024),   # explicit; safe on v5e/v6e/v7x
        cost_estimate=pl.CostEstimate(flops=flops, transcendentals=0,
                                      bytes_accessed=bytes_accessed),
    )(*args)


def _bn_scale_shift(key, c, eps=1e-5):
    """Deterministic eval-mode BatchNorm1d reduced to per-channel scale/shift."""
    kg, kb, km, kv = jax.random.split(key, 4)
    gamma = 1.0 + 0.1 * jax.random.normal(kg, (c,), jnp.float32)
    beta = 0.1 * jax.random.normal(kb, (c,), jnp.float32)
    mean = 0.1 * jax.random.normal(km, (c,), jnp.float32)
    var = 0.5 + jnp.abs(jax.random.normal(kv, (c,), jnp.float32))
    scale = gamma / jnp.sqrt(var + eps)
    shift = beta - mean * scale
    return scale, shift


def make_params(key, in_dim, out_dim, factor_bottle=2, kernel=3):
    """Kaiming conv weights + eval-mode BN, BN scale folded into the weights.

    Weight orientation (Cout, Cin) for the in-kernel (C, L) layout; bf16 weights
    (f32 MXU accumulation), f32 shifts.  The middle channel dim is zero-padded
    to a multiple of 16 (bf16 sublane packing) -- padded rows/columns are exact
    zeros, so results are unchanged.
    """
    assert kernel == 3
    mid = int(in_dim / factor_bottle)
    mid_p = ((mid + 15) // 16) * 16
    ks = jax.random.split(key, 8)
    w1 = jax.random.normal(ks[0], (mid, in_dim), jnp.float32) * np.sqrt(2.0 / in_dim)
    w2 = jax.random.normal(ks[1], (mid, mid, kernel), jnp.float32) * np.sqrt(2.0 / (mid * kernel))
    w3 = jax.random.normal(ks[2], (out_dim, mid), jnp.float32) * np.sqrt(2.0 / mid)
    wd = jax.random.normal(ks[3], (out_dim, in_dim), jnp.float32) * np.sqrt(2.0 / in_dim)
    s1, b1 = _bn_scale_shift(ks[4], mid)
    s2, b2 = _bn_scale_shift(ks[5], mid)
    s3, b3 = _bn_scale_shift(ks[6], out_dim)
    sd, bd = _bn_scale_shift(ks[7], out_dim)

    # Fold BN scale into the conv weights:  (W x) * s + b == (diag(s) W) x + b
    w1f = w1 * s1[:, None]
    w2f = w2 * s2[:, None, None]
    w3f = w3 * s3[:, None]
    wdf = wd * sd[:, None]

    pad = mid_p - mid
    w1p = jnp.pad(w1f, ((0, pad), (0, 0)))                     # (mid_p, in)
    b1p = jnp.pad(b1, ((0, pad),))
    w2p = jnp.pad(w2f, ((0, pad), (0, pad), (0, 0)))           # (mid_p, mid_p, 3)
    b2p = jnp.pad(b2, ((0, pad),))
    w3p = jnp.pad(w3f, ((0, 0), (0, pad)))                     # (out, mid_p)
    # Fuse the 3 conv2 taps on the contraction axis: (mid_p, 3*mid_p),
    # column blocks ordered [prev | centre | next] matching the kernel's stack.
    w2_flat = jnp.concatenate([w2p[:, :, 0], w2p[:, :, 1], w2p[:, :, 2]], axis=1)

    bf = jnp.bfloat16
    return dict(
        w1=w1p.astype(bf), b1=b1p.reshape(-1, 1),
        w2=w2_flat.astype(bf), b2=b2p.reshape(-1, 1),
        w3=w3p.astype(bf), b3=b3.reshape(-1, 1),
        wd=wdf.astype(bf), bd=bd.reshape(-1, 1),
    )


def reference_forward(x_ncl, p, *, use_downsample):
    """Pure-JAX reference with identical (bf16-in / f32-accumulate) semantics."""
    f32 = jnp.float32
    xb = x_ncl.astype(jnp.bfloat16)
    l = x_ncl.shape[-1]
    h = jnp.einsum("oc,ncl->nol", p["w1"], xb, preferred_element_type=f32)
    h = jnp.maximum(h + p["b1"][None], 0.0).astype(jnp.bfloat16)
    hp = jnp.pad(h, ((0, 0), (0, 0), (1, 1)))
    taps = jnp.concatenate(
        [hp[:, :, 0:l], hp[:, :, 1:l + 1], hp[:, :, 2:l + 2]], axis=1)
    h2 = jnp.einsum("ok,nkl->nol", p["w2"], taps, preferred_element_type=f32)
    h2 = jnp.maximum(h2 + p["b2"][None], 0.0).astype(jnp.bfloat16)
    h3 = jnp.einsum("oc,ncl->nol", p["w3"], h2, preferred_element_type=f32) + p["b3"][None]
    if use_downsample:
        ident = jnp.einsum("oc,ncl->nol", p["wd"], xb,
                           preferred_element_type=f32) + p["bd"][None]
    else:
        ident = xb.astype(f32)
    return jnp.maximum(h3 + ident, 0.0)


if __name__ == "__main__":
    key = jax.random.PRNGKey(0)

    # Config 1: in_dim != out_dim -> downsample branch, nt=4 (exercises halo).
    # Config 2: in_dim == out_dim -> identity residual, nt=2.
    configs = [
        dict(N=2, IN_DIM=16, OUT_DIM=32, L=2048, TILE_L=512),
        dict(N=2, IN_DIM=16, OUT_DIM=16, L=256, TILE_L=128),
    ]
    for cfg in configs:
        key, kx, kp = jax.random.split(key, 3)
        x_ncl = jax.random.normal(kx, (cfg["N"], cfg["IN_DIM"], cfg["L"]),
                                  jnp.float32)                  # PyTorch NCL layout
        params = make_params(kp, cfg["IN_DIM"], cfg["OUT_DIM"])
        use_ds = cfg["IN_DIM"] != cfg["OUT_DIM"]

        out = bottleneck_forward(x_ncl, params, use_downsample=use_ds,
                                 tile_l=cfg["TILE_L"])
        out = jax.block_until_ready(out)

        ref = reference_forward(x_ncl, params, use_downsample=use_ds)
        np.testing.assert_allclose(np.asarray(out, dtype=np.float32),
                                   np.asarray(ref), rtol=2e-2, atol=2e-2)

    print("KERNEL_OK")
</pallas_src>

<mosaic_0001>
module attributes {stable_mosaic.version = 11 : i64} {
  func.func @_bottleneck_kernel(%arg0: i32, %arg1: i32, %arg2: memref<1x16x512xf32, #tpu.memory_space<vmem>>, %arg3: memref<1x1x16x2xbf16, #tpu.memory_space<vmem>>, %arg4: memref<16x16xbf16, #tpu.memory_space<vmem>>, %arg5: memref<16x1xf32, #tpu.memory_space<vmem>>, %arg6: memref<16x48xbf16, #tpu.memory_space<vmem>>, %arg7: memref<16x1xf32, #tpu.memory_space<vmem>>, %arg8: memref<32x16xbf16, #tpu.memory_space<vmem>>, %arg9: memref<32x1xf32, #tpu.memory_space<vmem>>, %arg10: memref<32x16xbf16, #tpu.memory_space<vmem>>, %arg11: memref<32x1xf32, #tpu.memory_space<vmem>>, %arg12: memref<1x32x512xbf16, #tpu.memory_space<vmem>>) attributes {dimension_semantics = [#tpu.dimension_semantics<parallel>, #tpu.dimension_semantics<parallel>], iteration_bounds = array<i64: 2, 4>, scalar_prefetch = 0 : i64, scratch_operands = 0 : i64, tpu.core_type = #tpu.core_type<tc>, window_params = [{transform_indices = @transform_0, window_bounds = array<i64: 1, 16, 512>}, {transform_indices = @transform_1, window_bounds = array<i64: 1, 1, 16, 2>}, {pipeline_mode = #tpu.pipeline_mode<synchronous>, transform_indices = @transform_2, window_bounds = array<i64: 16, 16>}, {pipeline_mode = #tpu.pipeline_mode<synchronous>, transform_indices = @transform_3, window_bounds = array<i64: 16, 1>}, {pipeline_mode = #tpu.pipeline_mode<synchronous>, transform_indices = @transform_4, window_bounds = array<i64: 16, 48>}, {pipeline_mode = #tpu.pipeline_mode<synchronous>, transform_indices = @transform_5, window_bounds = array<i64: 16, 1>}, {pipeline_mode = #tpu.pipeline_mode<synchronous>, transform_indices = @transform_6, window_bounds = array<i64: 32, 16>}, {pipeline_mode = #tpu.pipeline_mode<synchronous>, transform_indices = @transform_7, window_bounds = array<i64: 32, 1>}, {pipeline_mode = #tpu.pipeline_mode<synchronous>, transform_indices = @transform_8, window_bounds = array<i64: 32, 16>}, {pipeline_mode = #tpu.pipeline_mode<synchronous>, transform_indices = @transform_9, window_bounds = array<i64: 32, 1>}, {transform_indices = @transform_10, window_bounds = array<i64: 1, 32, 512>}]} {
    %c0 = arith.constant 0 : index
    %c0_0 = arith.constant 0 : index
    %c0_1 = arith.constant 0 : index
    %0 = vector.load %arg2[%c0, %c0_0, %c0_1] : memref<1x16x512xf32, #tpu.memory_space<vmem>>, vector<1x16x512xf32>
    %1 = vector.shape_cast %0 : vector<1x16x512xf32> to vector<16x512xf32>
    %2 = arith.truncf %1 : vector<16x512xf32> to vector<16x512xbf16>
    %c0_2 = arith.constant 0 : index
    %c0_3 = arith.constant 0 : index
    %c0_4 = arith.constant 0 : index
    %c0_5 = arith.constant 0 : index
    %3 = vector.load %arg3[%c0_2, %c0_3, %c0_4, %c0_5] : memref<1x1x16x2xbf16, #tpu.memory_space<vmem>>, vector<1x1x16x2xbf16>
    %4 = vector.shape_cast %3 : vector<1x1x16x2xbf16> to vector<16x2xbf16>
    %5 = vector.extract_strided_slice %4 {offsets = [0, 0], sizes = [16, 1], strides = [1, 1]} : vector<16x2xbf16> to vector<16x1xbf16>
    %6 = vector.extract_strided_slice %4 {offsets = [0, 1], sizes = [16, 1], strides = [1, 1]} : vector<16x2xbf16> to vector<16x1xbf16>
    %7 = tpu.concatenate %5, %2, %6 in 1 : vector<16x1xbf16>, vector<16x512xbf16>, vector<16x1xbf16> -> vector<16x514xbf16>
    %c0_6 = arith.constant 0 : index
    %c0_7 = arith.constant 0 : index
    %8 = vector.load %arg4[%c0_6, %c0_7] : memref<16x16xbf16, #tpu.memory_space<vmem>>, vector<16x16xbf16>
    %cst = arith.constant dense<0.000000e+00> : vector<16x514xf32>
    %9 = tpu.matmul %8, %7, %cst {dimension_numbers = #tpu.dot_dimension_numbers<[1], [0], [0], [1], [0, 0, 1, 1], [], []>} : vector<16x16xbf16>, vector<16x514xbf16>, vector<16x514xf32> -> vector<16x514xf32>
    %c0_8 = arith.constant 0 : index
    %c0_9 = arith.constant 0 : index
    %10 = vector.load %arg5[%c0_8, %c0_9] : memref<16x1xf32, #tpu.memory_space<vmem>>, vector<16x1xf32>
    %11 = vector.broadcast %10 : vector<16x1xf32> to vector<16x514xf32>
    %12 = arith.addf %9, %11 : vector<16x514xf32>
    %cst_10 = arith.constant 0.000000e+00 : f32
    %13 = vector.broadcast %cst_10 : f32 to vector<16x514xf32>
    %14 = arith.maximumf %12, %13 : vector<16x514xf32>
    %c0_i32 = arith.constant 0 : i32
    %15 = arith.cmpi sgt, %arg1, %c0_i32 : i32
    %16 = vector.extract_strided_slice %14 {offsets = [0, 0], sizes = [16, 1], strides = [1, 1]} : vector<16x514xf32> to vector<16x1xf32>
    %cst_11 = arith.constant 0.000000e+00 : f32
    %17 = vector.broadcast %cst_11 : f32 to vector<16x1xf32>
    %18 = arith.select %15, %16, %17 : vector<16x1xf32>
    %c3_i32 = arith.constant 3 : i32
    %19 = arith.cmpi slt, %arg1, %c3_i32 : i32
    %20 = vector.extract_strided_slice %14 {offsets = [0, 513], sizes = [16, 1], strides = [1, 1]} : vector<16x514xf32> to vector<16x1xf32>
    %cst_12 = arith.constant 0.000000e+00 : f32
    %21 = vector.broadcast %cst_12 : f32 to vector<16x1xf32>
    %22 = arith.select %19, %20, %21 : vector<16x1xf32>
    %23 = vector.extract_strided_slice %14 {offsets = [0, 1], sizes = [16, 512], strides = [1, 1]} : vector<16x514xf32> to vector<16x512xf32>
    %24 = tpu.concatenate %18, %23, %22 in 1 : vector<16x1xf32>, vector<16x512xf32>, vector<16x1xf32> -> vector<16x514xf32>
    %25 = arith.truncf %24 : vector<16x514xf32> to vector<16x514xbf16>
    %26 = vector.extract_strided_slice %25 {offsets = [0, 0], sizes = [16, 512], strides = [1, 1]} : vector<16x514xbf16> to vector<16x512xbf16>
    %27 = vector.extract_strided_slice %25 {offsets = [0, 1], sizes = [16, 512], strides = [1, 1]} : vector<16x514xbf16> to vector<16x512xbf16>
    %28 = vector.extract_strided_slice %25 {offsets = [0, 2], sizes = [16, 512], strides = [1, 1]} : vector<16x514xbf16> to vector<16x512xbf16>
    %29 = tpu.concatenate %26, %27, %28 in 0 : vector<16x512xbf16>, vector<16x512xbf16>, vector<16x512xbf16> -> vector<48x512xbf16>
    %c0_13 = arith.constant 0 : index
    %c0_14 = arith.constant 0 : index
    %30 = vector.load %arg6[%c0_13, %c0_14] : memref<16x48xbf16, #tpu.memory_space<vmem>>, vector<16x48xbf16>
    %cst_15 = arith.constant dense<0.000000e+00> : vector<16x512xf32>
    %31 = tpu.matmul %30, %29, %cst_15 {dimension_numbers = #tpu.dot_dimension_numbers<[1], [0], [0], [1], [0, 0, 1, 1], [], []>} : vector<16x48xbf16>, vector<48x512xbf16>, vector<16x512xf32> -> vector<16x512xf32>
    %c0_16 = arith.constant 0 : index
    %c0_17 = arith.constant 0 : index
    %32 = vector.load %arg7[%c0_16, %c0_17] : memref<16x1xf32, #tpu.memory_space<vmem>>, vector<16x1xf32>
    %33 = vector.broadcast %32 : vector<16x1xf32> to vector<16x512xf32>
    %34 = arith.addf %31, %33 : vector<16x512xf32>
    %cst_18 = arith.constant 0.000000e+00 : f32
    %35 = vector.broadcast %cst_18 : f32 to vector<16x512xf32>
    %36 = arith.maximumf %34, %35 : vector<16x512xf32>
    %37 = arith.truncf %36 : vector<16x512xf32> to vector<16x512xbf16>
    %c0_19 = arith.constant 0 : index
    %c0_20 = arith.constant 0 : index
    %38 = vector.load %arg8[%c0_19, %c0_20] : memref<32x16xbf16, #tpu.memory_space<vmem>>, vector<32x16xbf16>
    %cst_21 = arith.constant dense<0.000000e+00> : vector<32x512xf32>
    %39 = tpu.matmul %38, %37, %cst_21 {dimension_numbers = #tpu.dot_dimension_numbers<[1], [0], [0], [1], [0, 0, 1, 1], [], []>} : vector<32x16xbf16>, vector<16x512xbf16>, vector<32x512xf32> -> vector<32x512xf32>
    %c0_22 = arith.constant 0 : index
    %c0_23 = arith.constant 0 : index
    %40 = vector.load %arg9[%c0_22, %c0_23] : memref<32x1xf32, #tpu.memory_space<vmem>>, vector<32x1xf32>
    %41 = vector.broadcast %40 : vector<32x1xf32> to vector<32x512xf32>
    %42 = arith.addf %39, %41 : vector<32x512xf32>
    %c0_24 = arith.constant 0 : index
    %c0_25 = arith.constant 0 : index
    %43 = vector.load %arg10[%c0_24, %c0_25] : memref<32x16xbf16, #tpu.memory_space<vmem>>, vector<32x16xbf16>
    %cst_26 = arith.constant dense<0.000000e+00> : vector<32x512xf32>
    %44 = tpu.matmul %43, %2, %cst_26 {dimension_numbers = #tpu.dot_dimension_numbers<[1], [0], [0], [1], [0, 0, 1, 1], [], []>} : vector<32x16xbf16>, vector<16x512xbf16>, vector<32x512xf32> -> vector<32x512xf32>
    %c0_27 = arith.constant 0 : index
    %c0_28 = arith.constant 0 : index
    %45 = vector.load %arg11[%c0_27, %c0_28] : memref<32x1xf32, #tpu.memory_space<vmem>>, vector<32x1xf32>
    %46 = vector.broadcast %45 : vector<32x1xf32> to vector<32x512xf32>
    %47 = arith.addf %44, %46 : vector<32x512xf32>
    %48 = arith.addf %42, %47 : vector<32x512xf32>
    %cst_29 = arith.constant 0.000000e+00 : f32
    %49 = vector.broadcast %cst_29 : f32 to vector<32x512xf32>
    %50 = arith.maximumf %48, %49 : vector<32x512xf32>
    %51 = arith.truncf %50 : vector<32x512xf32> to vector<32x512xbf16>
    %c0_30 = arith.constant 0 : index
    %c0_31 = arith.constant 0 : index
    %c0_32 = arith.constant 0 : index
    %52 = vector.load %arg12[%c0_30, %c0_31, %c0_32] : memref<1x32x512xbf16, #tpu.memory_space<vmem>>, vector<1x32x512xbf16>
    %53 = vector.shape_cast %52 : vector<1x32x512xbf16> to vector<32x512xbf16>
    %54 = vector.shape_cast %51 : vector<32x512xbf16> to vector<1x32x512xbf16>
    tpu.vector_store %arg12[%c0_30, %c0_31, %c0_32], %54 {strides = array<i32>} : memref<1x32x512xbf16, #tpu.memory_space<vmem>>, vector<1x32x512xbf16>,
    return
  }
  func.func @transform_0(%arg0: i32, %arg1: i32) -> (i32, i32, i32) {
    %c0_i32 = arith.constant 0 : i32
    %c0_i32_0 = arith.constant 0 : i32
    return %arg0, %c0_i32, %arg1 : i32, i32, i32
  }
  func.func @transform_1(%arg0: i32, %arg1: i32) -> (i32, i32, i32, i32) {
    %c0_i32 = arith.constant 0 : i32
    %c0_i32_0 = arith.constant 0 : i32
    %c0_i32_1 = arith.constant 0 : i32
    return %arg0, %arg1, %c0_i32, %c0_i32_0 : i32, i32, i32, i32
  }
  func.func @transform_2(%arg0: i32, %arg1: i32) -> (i32, i32) {
    %c0_i32 = arith.constant 0 : i32
    %c0_i32_0 = arith.constant 0 : i32
    %c0_i32_1 = arith.constant 0 : i32
    return %c0_i32, %c0_i32_0 : i32, i32
  }
  func.func @transform_3(%arg0: i32, %arg1: i32) -> (i32, i32) {
    %c0_i32 = arith.constant 0 : i32
    %c0_i32_0 = arith.constant 0 : i32
    %c0_i32_1 = arith.constant 0 : i32
    return %c0_i32, %c0_i32_0 : i32, i32
  }
  func.func @transform_4(%arg0: i32, %arg1: i32) -> (i32, i32) {
    %c0_i32 = arith.constant 0 : i32
    %c0_i32_0 = arith.constant 0 : i32
    %c0_i32_1 = arith.constant 0 : i32
    return %c0_i32, %c0_i32_0 : i32, i32
  }
  func.func @transform_5(%arg0: i32, %arg1: i32) -> (i32, i32) {
    %c0_i32 = arith.constant 0 : i32
    %c0_i32_0 = arith.constant 0 : i32
    %c0_i32_1 = arith.constant 0 : i32
    return %c0_i32, %c0_i32_0 : i32, i32
  }
  func.func @transform_6(%arg0: i32, %arg1: i32) -> (i32, i32) {
    %c0_i32 = arith.constant 0 : i32
    %c0_i32_0 = arith.constant 0 : i32
    %c0_i32_1 = arith.constant 0 : i32
    return %c0_i32, %c0_i32_0 : i32, i32
  }
  func.func @transform_7(%arg0: i32, %arg1: i32) -> (i32, i32) {
    %c0_i32 = arith.constant 0 : i32
    %c0_i32_0 = arith.constant 0 : i32
    %c0_i32_1 = arith.constant 0 : i32
    return %c0_i32, %c0_i32_0 : i32, i32
  }
  func.func @transform_8(%arg0: i32, %arg1: i32) -> (i32, i32) {
    %c0_i32 = arith.constant 0 : i32
    %c0_i32_0 = arith.constant 0 : i32
    %c0_i32_1 = arith.constant 0 : i32
    return %c0_i32, %c0_i32_0 : i32, i32
  }
  func.func @transform_9(%arg0: i32, %arg1: i32) -> (i32, i32) {
    %c0_i32 = arith.constant 0 : i32
    %c0_i32_0 = arith.constant 0 : i32
    %c0_i32_1 = arith.constant 0 : i32
    return %c0_i32, %c0_i32_0 : i32, i32
  }
  func.func @transform_10(%arg0: i32, %arg1: i32) -> (i32, i32, i32) {
    %c0_i32 = arith.constant 0 : i32
    %c0_i32_0 = arith.constant 0 : i32
    return %arg0, %c0_i32, %arg1 : i32, i32, i32
  }
}

</mosaic_0001>

<bundles_post_ra>
// kernel: tpu_custom_call.1
= control target key start
LH: loop header
LB: loop body
LE: loop exit
PB: predicated region body
PF: predicated region fallthrough
CT: control target
= control target key end

     0   :  { %s1887_s0 = inlined_call_operand.hbm [shape: f32[2,16,2048], index: 0, kind: input, shape index: {}]   ;;  %s1888_s1 = inlined_call_operand.vmem [shape: bf16[2,4,16,2], index: 1, kind: input, shape index: {}]   ;;  %s1889_s2 = inlined_call_operand.vmem [shape: bf16[16,16], index: 2, kind: input, shape index: {}]   ;;  %s1890_s3 = inlined_call_operand.vmem [shape: f32[16,1], index: 3, kind: input, shape index: {}]   ;;  %s1891_s4 = inlined_call_operand.vmem [shape: bf16[16,48], index: 4, kind: input, shape index: {}]   ;;  %s1892_s5 = inlined_call_operand.vmem [shape: f32[16,1], index: 5, kind: input, shape index: {}]   ;;  %s1893_s6 = inlined_call_operand.vmem [shape: bf16[32,16], index: 6, kind: input, shape index: {}]   ;;  %s1894_s7 = inlined_call_operand.vmem [shape: f32[32,1], index: 7, kind: input, shape index: {}]   ;;  %s1895_s8 = inlined_call_operand.vmem [shape: bf16[32,16], index: 8, kind: input, shape index: {}]   ;;  %s1896_s9 = inlined_call_operand.vmem [shape: f32[32,1], index: 9, kind: input, shape index: {}]   ;;  %s1897_s10 = inlined_call_operand.hbm [shape: bf16[2,32,2048], index: 10, kind: output, shape index: {}]  }
   0x1   :  { %1909 = sst [smem:[#allocation16_spill]] %s1893_s6 }
   0x2   :  { %1910 = sst [smem:[#allocation17_spill]] %s1895_s8 }
   0x3   :  { %1911 = sst [smem:[#allocation18_spill]] %s1897_s10 }
   0x4   :  { %15 = vsyncpa [#allocation3], 0 }
   0x5   :  { %17 = vsyncpa [#allocation3 + $0x1], 0 }
   0x6   :  { %18 = vsyncpa [#allocation4], 0 }
   0x7   :  { %20 = vsyncpa [#allocation4 + $0x1], 0  ;;  %s1559_s13 = smov 0   ;;  %s1561_s14 = smov 0  }
   0x8   :  { %s1563_s15 = smov 0   ;;  %s1565_s16 = smov 0  }
   0x9   :  { %s1567_s17 = smov 0   ;;  %s1569_s18 = smov 0  }
   0xa   :  { %s1571_s19 = smov 0   ;;  %s1573_s20 = smov 0  }
   0xb LB: > { %1912 = sst [smem:[#allocation8_spill]] %s1464_s13  ;;  %s1193_s21 = sadd.s32 4294967295, %s1492_s20   ;;  %s1492_s20 = sphi %s1573_s20, %s26_s20   ;;  %s1488_s19 = sphi %s1571_s19, %s1940_s19   ;;  %s1484_s18 = sphi %s1569_s18, %s1939_s18   ;;  %s1480_s17 = sphi %s1567_s17, %s1938_s17   ;;  %s1476_s16 = sphi %s1565_s16, %s1933_s16   ;;  %s1472_s15 = sphi %s1563_s15, %s1932_s15   ;;  %s1468_s14 = sphi %s1561_s14, %s1937_s14   ;;  %s1464_s13 = sphi %s1559_s13, %s1936_s13  }
   0xc   : > { %1913 = sst [smem:[#allocation9_spill]] %s1472_s15  ;;  %s1194_s22 = sadd.s32 4294967294, %s1492_s20  }
   0xd   : > { %1914 = sst [smem:[#allocation10_spill]] %s1484_s18  ;;  %s35_s23 = sadd.s32 1, %s1484_s18 }
   0xe   : > { %s38_s24 = sadd.s32 1, %s1488_s19  ;;  %p36_p0 = scmp.ge.s32.totalorder %s35_s23, 4 }
   0xf   : > { %s47_s25 = sadd.s32 1, %s1472_s15  ;;  %p54_p1 = scmp.ne.s32.totalorder %s1472_s15, %s1468_s14 }
  0x10   : > { %p55_p2 = scmp.eq.s32.totalorder %s1492_s20, 0  ;;  %s1942_s23 = smov (%p36_p0, %s35_s23), 0 }
  0x11   : > { %1915 = sst [smem:[#allocation11_spill]] %s1942_s23  ;;  %s1944_s24 = smov (!%p36_p0, %s38_s24), %s1488_s19 }
  0x12   : > { %s43_s26 = ssub.s32 %s1484_s18, %s1942_s23  ;;  %p1612_p3 = por %p55_p2, %p54_p1 }
  0x13   : > { %p40_p4 = scmp.ge.s32.totalorder %s1944_s24, 2  ;;  %p60_p5 = scmp.ne.s32.totalorder %s1468_s14, %s1464_s13 }
  0x14   : > { %p61_p6 = scmp.eq.s32.totalorder %s1193_s21, 0  ;;  %p282_p7 = scmp.eq.s32.totalorder %s1193_s21, 7 }
  0x15   : > { %s1946_s24 = smov (%p40_p4, %s1944_s24), 0  ;;  %p288_p10 = scmp.eq.s32.totalorder %s1194_s22, 7 }
  0x16   : > { %1917 = sst [smem:[#allocation12_spill]] %s1946_s24  ;;  %p1620_p8 = por %p61_p6, %p60_p5 }
  0x17   : > { %p1624_p9 = por %p282_p7, %p54_p1  ;;  %s42_s30 = ssub.s32 %s1488_s19, %s1946_s24 }
  0x18   : > { %s44_s11 = sor.u32 %s43_s26, %s42_s30  ;;  %p1630_p12 = por %p288_p10, %p60_p5 }
  0x19   : > { %s1919_s29 = scalar_select %p1624_p9, 1, 0 }
  0x1a   : > { %p45_p11 = scmp.eq.s32.totalorder %s44_s11, 0  ;;  %p1285_p13 = scmp.lt.s32.totalorder %s1492_s20, 8 }
  0x1b   : > { %1920 = sst [smem:[#allocation13_spill]] %s1919_s29  ;;  %s332_s21 = sand.u32 1, %s1472_s15  }
  0x1c   : > { %s1921_s12 = scalar_select %p1630_p12, 1, 0 }
  0x1d   : > { %s1637_s23 = scalar_select %p45_p11, %s1472_s15, %s47_s25  }
  0x1e   : > { %1922 = sst [smem:[#allocation14_spill]] %s1921_s12  ;;  %s1197_s13 = sshll.u32 %s332_s21, 6 }
  0x1f   : > { %1923 = sst [smem:[#allocation15_spill]] %s1637_s23  ;;  %s1198_s10 = sshll.u32 %s1484_s18, 2 }
  0x20   : > { %s1199_s8 = sshll.u32 %s1488_s19, 5  ;;  %s336_s6 = scalar_lea.vmem [#allocation2], %s1197_s13 }
  0x21   : > { %s346_s29 = sshll.u32 %s336_s6, 4  ;;  %s341_s24 = sadd.s32 %s1199_s8, %s1198_s10  ;;  %s347_s29 = int_to_ptr.vmem [resolvable:$true] %s346_s29 }
  0x22   : > { %s1200_s22 = sshll.u32 %s341_s24, 3  ;;  %p1278_p0 = pnand %p1285_p13, %p1612_p3 }
  0x23   : > { %s343_s11 = scalar_lea.hbm %s1887_s0, %s1200_s22  ;;  %p1201_p1 = scmp.ge.s32.totalorder %s1492_s20, 1 }
  0x24   : > { %s344_s12 = sshll.u32 %s343_s11, 4  ;;  %s333_s25 = scalar_lea.sflag [#allocation3], %s332_s21  ;;  %s345_s12 = int_to_ptr.hbm [resolvable:$true] %s344_s12 }
  0x25   : > { %s1494_s23 = smov 2048   ;;  %s1495_s15 = smov 512  }
  0x26   : > { %s1496_s18 = smov 32   ;;  %p366_p2 = scmp.lt.s32.totalorder %s1492_s20, 9 }
  0x27   : > { %1280 = dma.hbm_to_vmem [thread:$0]  (!%p1278_p0), %s345_s12, 1024, %s347_s29, %s333_s25, %s1494_s23, %s1495_s15, %s1496_s18  }
  0x28   : > { %p367_p4 = pnand %p1201_p1, %p366_p2 }
  0x29   : > { %s1649_s6 = sand.u32 (!%p367_p4), 1, %s1468_s14  }
  0x2a   : > { %370 = sbr.rel (%p367_p4) target bundleno = 819 (0x333), region = 60  ;;  %s1202_s8 = sshll.u32 (!%p367_p4), %s1649_s6, 6 }
  0x2b   : > { %s373_s10 = scalar_lea.sflag (!%p367_p4), [#allocation3], %s1649_s6  ;;  %s376_s13 = scalar_lea.vmem (!%p367_p4), [#allocation2], %s1202_s8 }
  0x2f   : > { %1455 = dma.done.wait (%p1620_p8), %s373_s10, 1024  }
  0x30   : > { %1457 = vsyncadd (%p1620_p8), %s373_s10, 4294966272  ;;  %v437_v0 = vld [vmem:[%s376_s13 + $0x10] sm:$0xff]  ;;  %v438_v1 = vld [vmem:[%s376_s13 + $0x18] sm:$0xff]  ;;  %s1497_s15 = smov 1   ;;  %p424_p3 = scmp.lt.s32.totalorder %s1480_s17, 1  ;;  %v1498_v25 = vmov 0  }
  0x31   : > { %v441_v2 = vld [vmem:[%s376_s13 + $0x30] sm:$0xff]  ;;  %v442_v3 = vld [vmem:[%s376_s13 + $0x38] sm:$0xff]  ;;  %v444_v4 = vpack.c.bf16 %v438_v1, %v437_v0  ;;  %v435_v5 = vld [vmem:[%s376_s13] sm:$0xff]  ;;  %p426_p5 = scmp.lt.s32.totalorder %s1476_s16, 3  ;;  %1361 = vset.pattern.permute.xlu2 %v1498_v25  ;;  %1362 = vset.pattern.permute.xlu1 %v1498_v25  ;;  %vm478_vm0 = vcmask 7168   ;;  %vm512_vm1 = vcmask 130048  }
  0x32   : > { %v436_v6 = vld [vmem:[%s376_s13 + $0x8] sm:$0xff]  ;;  %v446_v7 = vpack.c.bf16 %v442_v3, %v441_v2  ;;  %v439_v8 = vld [vmem:[%s376_s13 + $0x20] sm:$0xff]  ;;  %s425_s18 = scalar_select %p424_p3, %s1480_s17, 1  ;;  %1363 = vset.pattern.permute.xlu0 %v1498_v25  ;;  %vm672_vm4 = vcmask 1031168   ;;  %vm653_vm5 = vcmask 1039360   ;;  %vm700_vm6 = vcmask 392192  }
  0x33   : > { %v440_v9 = vld [vmem:[%s376_s13 + $0x28] sm:$0xff]  ;;  %v443_v10 = vpack.c.bf16 %v436_v6, %v435_v5  ;;  %v460_v11 = vunpack.c.l.b16 %v444_v4  ;;  %v461_v18 = vunpack.c.h.b16 %v444_v4  ;;  %s427_s23 = scalar_select %p426_p5, %s1476_s16, 3  ;;  %v495_v24 = vld [vmem:[%s1890_s3] sm:$0xff] }
  0x34   : > { %v445_v12 = vpack.c.bf16 %v440_v9, %v439_v8  ;;  %v464_v13 = vunpack.c.l.b16 %v446_v7  ;;  %v465_v19 = vunpack.c.h.b16 %v446_v7  ;;  %s1205_s27 = sshll.u32 %s425_s18, 3  ;;  %499 = vperm.xlu2 %1361, %v495_v24   ;;  %v496_v26 = vld [vmem:[%s1890_s3 + $0x8] sm:$0xff]  ;;  %v1267_v31 = vld [vmem:[%s1889_s2] sm:$0xff]  ;;  %p596_p6 = scmp.gt.s32.totalorder %s1476_s16, 0 }
  0x35   : > { %v458_v14 = vunpack.c.l.b16 %v443_v10  ;;  %v459_v20 = vunpack.c.h.b16 %v443_v10  ;;  %s1204_s24 = sshll.u32 %s427_s23, 1  ;;  %s1499_s23 = smov 126  }
  0x36   : > { %v462_v15 = vunpack.c.l.b16 %v445_v12  ;;  %v1659_v16 = vpack.c.b16 %v464_v13, %v460_v11  ;;  %v463_v21 = vunpack.c.h.b16 %v445_v12  ;;  %v1665_v22 = vpack.c.b16 %v465_v19, %v461_v18  ;;  %s430_s28 = sadd.s32 %s1205_s27, %s1204_s24  ;;  %s1500_s24 = smov 127  }
  0x37   : > { %s1206_s21 = sshll.u32 %s430_s28, 2  ;;  %s1924_s26 = sld [smem:[#allocation16_spill]] }
  0x38   : > { %v1661_v17 = vpack.c.b16 %v462_v15, %v458_v14  ;;  %474 = vrot.lane.b32.xlu1 %v1659_v16, %s1497_s15  ;;  %v1667_v23 = vpack.c.b16 %v463_v21, %v459_v20  ;;  %s432_s30 = scalar_lea.vmem %s1888_s1, %s1206_s21  ;;  %s1816_s28 = scalar_lea.vmem [#allocation5], %s1202_s8 }
  0x39   : > { %v1266_v27 = vld [vmem:[%s432_s30] sm:$0xff]  ;;  %s603_s18 = scalar_select %p426_p5, 1, 0 }
  0x3a   : > { %470 = vrot.lane.b32.xlu0 %v1661_v17, %s1497_s15  ;;  %s1261_s8 = sshll.u32 %s1476_s16, 2  ;;  %s1262_s29 = sshll.u32 %s1480_s17, 6 }
  0x3b   : > { %v604_v19 = vstv %s603_s18  ;;  %s1925_s18 = sld [smem:[#allocation17_spill]]  ;;  %s1076_s16 = sadd.s32 %s1262_s29, %s1261_s8 }
  0x3c   : > { %504 = vperm.xlu2 %1361, %v496_v26   ;;  %vm605_vm3 = vcmp.eq.s32.totalorder %v604_v19, 1  ;;  %s1263_s17 = sshll.u32 %s1076_s16, 2  ;;  %s1927_s22 = sld [smem:[#allocation18_spill]] }
  0x3d   : > { %s1079_s11 = sshll.u32 %s1816_s28, 4  ;;  %s1065_s13 = scalar_lea.sflag [#allocation4], %s1649_s6  ;;  %s1080_s11 = int_to_ptr.vmem [resolvable:$true] %s1079_s11 }
  0x40   : > { %476 = vrot.lane.b32.xlu1 %v1665_v22, %s1497_s15 }
  0x42   : > { %472 = vrot.lane.b32.xlu0 %v1667_v23, %s1497_s15  ;;  %s597_s15 = scalar_select %p596_p6, 1, 0 }
  0x43   : > { %s1078_s30 = scalar_lea.hbm %s1927_s22, %s1263_s17  ;;  %s1414_s8 = scalar_lea.hbm %s1927_s22, 512 }
  0x44   : > { %v598_v42 = vstv %s597_s15  ;;  %s1081_s25 = sshll.u32 %s1078_s30, 4  ;;  %s1082_s25 = int_to_ptr.hbm [resolvable:$true] %s1081_s25 }
  0x45   : > { %vm599_vm2 = vcmp.eq.s32.totalorder %v598_v42, 1  ;;  %v778_v42 = vld [vmem:[%s1894_s7 + $0x10] sm:$0xff]  ;;  %s1408_s15 = sshra.s32 %s1082_s25, 4  ;;  %s1409_s15 = int_to_ptr.hbm [resolvable:$true] %s1408_s15 }
  0x46   : > { %p1415_p11 = scmp.lt.s32.totalorder %s1409_s15, %s1927_s22 }
  0x8e   : > { %v500_v38 = vpop.permute.xlu2 %499 }
  0x96   : > { %v505_v41 = vpop.permute.xlu2 %504 }
  0xaa   : > { %v475_v28 = vpop.permute.xlu1 %474 }
  0xac   : > { %v471_v29 = vpop.permute.xlu0 %470 }
  0xad   : > { %v488_v30 = vsel %vm478_vm0, %v1266_v27, %v471_v29 }
  0xae   : > { %523 = vmatpush.bf16.msra.mxu0 %v488_v30 }
  0xb1   : > { %1215 = vmatmul.msk.bf16.vlgmr.msra.gmra.mxu0 %vm512_vm1, %v1267_v31 }
  0xb2   : > { %v477_v32 = vpop.permute.xlu1 %476 }
  0xb3   : > { %v481_v34 = vsel %vm478_vm0, %v475_v28, %v477_v32  ;;  %v491_v35 = vsel %vm478_vm0, %v477_v32, %v1266_v27 }
  0xb4   : > { %v473_v33 = vpop.permute.xlu0 %472  ;;  %565 = vmatpush.bf16.msra.mxu3 %v481_v34  ;;  %579 = vmatpush.bf16.msrb.mxu0 %v491_v35 }
  0xb5   : > { %v479_v36 = vsel %vm478_vm0, %v471_v29, %v473_v33  ;;  %v480_v37 = vsel %vm478_vm0, %v473_v33, %v475_v28 }
  0xb6   : > { %537 = vmatpush.bf16.msra.mxu1 %v479_v36  ;;  %551 = vmatpush.bf16.msra.mxu2 %v480_v37 }
  0xb7   : > { %1218 = vmatmul.msk.bf16.vlgmr.msra.gmra.mxu3 %vm512_vm1, %v1267_v31 }
  0xb9   : > { %1216 = vmatmul.msk.bf16.vlgmr.msra.gmra.mxu1 %vm512_vm1, %v1267_v31  ;;  %1217 = vmatmul.msk.bf16.vlgmr.msra.gmra.mxu2 %vm512_vm1, %v1267_v31 }
  0xc1   : > { %1219 = vmatmul.msk.bf16.vlgmr.msrb.gmra.mxu0 %vm512_vm1, %v1267_v31 }
 0x12e   : > { %v525_v39 = vpop.f32.mrf.mxu0 }
 0x12f   : > { %v526_v40 = vadd.f32 %v525_v39, %v500_v38 }
 0x131   : > { %v586_v45 = vmax.f32 %v526_v40, 0.0 }
 0x133   : > { %v600_v48 = vsel %vm599_vm2, %v586_v45, 0.0 }
 0x134   : > { %v608_v53 = vsel %vm478_vm0, %v600_v48, %v586_v45  ;;  %v683_v45 = vld [vmem:[%s1892_s5] sm:$0xff] }
 0x136   : > { %v527_v43 = vpop.f32.mrf.mxu0  ;;  %v539_v44 = vpop.f32.mrf.mxu1 }
 0x137   : > { %v528_v46 = vadd.f32 %v527_v43, %v505_v41  ;;  %v540_v47 = vadd.f32 %v539_v44, %v500_v38  ;;  %v896_v43 = vld [vmem:[%s1896_s9] sm:$0xff]  ;;  %v899_v44 = vld [vmem:[%s1896_s9 + $0x18] sm:$0xff] }
 0x139   : > { %v591_v49 = vmax.f32 %v528_v46, 0.0  ;;  %v587_v52 = vmax.f32 %v540_v47, 0.0  ;;  %v777_v46 = vld [vmem:[%s1894_s7 + $0x8] sm:$0xff] }
 0x13a   : > { %v567_v50 = vpop.f32.mrf.mxu3 }
 0x13b   : > { %v568_v55 = vadd.f32 %v567_v50, %v500_v38  ;;  %v601_v58 = vsel %vm599_vm2, %v591_v49, 0.0  ;;  %v612_v60 = vpack.c.bf16 %v587_v52, %v608_v53  ;;  %v779_v50 = vld [vmem:[%s1894_s7 + $0x18] sm:$0xff] }
 0x13c   : > { %v553_v51 = vpop.f32.mrf.mxu2  ;;  %v609_v0 = vsel %vm478_vm0, %v601_v58, %v591_v49 }
 0x13d   : > { %v554_v54 = vadd.f32 %v553_v51, %v500_v38  ;;  %v589_v63 = vmax.f32 %v568_v55, 0.0  ;;  %v623_v5 = vunpack.c.h.b16 %v612_v60  ;;  %v622_v34 = vunpack.c.l.b16 %v612_v60 }
 0x13e   : > { %v541_v56 = vpop.f32.mrf.mxu1  ;;  %v581_v57 = vpop.f32.mrf.mxu0 }
 0x13f   : > { %v542_v59 = vadd.f32 %v541_v56, %v505_v41  ;;  %v588_v62 = vmax.f32 %v554_v54, 0.0  ;;  %v582_v14 = vadd.f32 %v581_v57, %v500_v38  ;;  %v898_v56 = vld [vmem:[%s1896_s9 + $0x10] sm:$0xff] }
 0x141   : > { %v592_v61 = vmax.f32 %v542_v59, 0.0  ;;  %v613_v8 = vpack.c.bf16 %v589_v63, %v588_v62  ;;  %v590_v26 = vmax.f32 %v582_v14, 0.0 }
 0x142   : > { %v569_v2 = vpop.f32.mrf.mxu3 }
 0x143   : > { %v615_v1 = vpack.c.bf16 %v592_v61, %v609_v0  ;;  %v570_v4 = vadd.f32 %v569_v2, %v505_v41  ;;  %v624_v18 = vunpack.c.l.b16 %v613_v8  ;;  %v625_v20 = vunpack.c.h.b16 %v613_v8  ;;  %v1268_v61 = vld [vmem:[%s1891_s4] sm:$0xff] }
 0x144   : > { %v555_v3 = vpop.f32.mrf.mxu2  ;;  %v606_v30 = vsel %vm605_vm3, %v590_v26, 0.0 }
 0x145   : > { %v627_v6 = vunpack.c.h.b16 %v615_v1  ;;  %v556_v7 = vadd.f32 %v555_v3, %v505_v41  ;;  %v594_v9 = vmax.f32 %v570_v4, 0.0  ;;  %v626_v32 = vunpack.c.l.b16 %v615_v1 }
 0x146   : > { %v583_v10 = vpop.f32.mrf.mxu0  ;;  %v610_v33 = vsel %vm478_vm0, %v590_v26, %v606_v30 }
 0x147   : > { %v593_v11 = vmax.f32 %v556_v7, 0.0  ;;  %v584_v12 = vadd.f32 %v583_v10, %v505_v41  ;;  %v1704_v13 = vpack.c.b16 %v627_v6, %v623_v5  ;;  %v614_v36 = vpack.c.bf16 %v610_v33, %v610_v33  ;;  %v684_v41 = vld [vmem:[%s1892_s5 + $0x8] sm:$0xff]  ;;  %v776_v7 = vld [vmem:[%s1894_s7] sm:$0xff] }
 0x148   : > { %v630_v37 = vpack.c.b16 %v626_v32, %v622_v34 }
 0x149   : > { %v616_v15 = vpack.c.bf16 %v594_v9, %v593_v11  ;;  %664 = vrot.lane.b32.xlu0 %v1704_v13, %s1499_s23  ;;  %v595_v25 = vmax.f32 %v584_v12, 0.0  ;;  %v640_v39 = vunpack.c.l.b16 %v614_v36 }
 0x14b   : > { %v628_v21 = vunpack.c.l.b16 %v616_v15  ;;  %v629_v24 = vunpack.c.h.b16 %v616_v15  ;;  %v607_v29 = vsel %vm605_vm3, %v595_v25, 0.0 }
 0x14c   : > { %v611_v31 = vsel %vm478_vm0, %v595_v25, %v607_v29 }
 0x14d   : > { %v1708_v27 = vpack.c.b16 %v629_v24, %v625_v20  ;;  %v632_v28 = vpack.c.b16 %v628_v21, %v624_v18  ;;  %v617_v35 = vpack.c.bf16 %v611_v31, %v611_v31 }
 0x14f   : > { %668 = vrot.lane.b32.xlu2 %v1708_v27, %s1499_s23  ;;  %666 = vrot.lane.b32.xlu1 %v632_v28, %s1499_s23  ;;  %v641_v38 = vunpack.c.l.b16 %v617_v35  ;;  %v1269_v35 = vld [vmem:[%s1924_s26] sm:$0xff] }
 0x151   : > { %645 = vrot.lane.b32.xlu0 %v1704_v13, %s1500_s24  ;;  %v642_v40 = vpack.c.b16 %v641_v38, %v640_v39 }
 0x157   : > { %649 = vrot.lane.b32.xlu2 %v1708_v27, %s1500_s24  ;;  %647 = vrot.lane.b32.xlu1 %v632_v28, %s1500_s24 }
 0x159   : > { %662 = vrot.lane.b32.xlu0 %v630_v37, %s1499_s23 }
 0x15f   : > { %670 = vrot.lane.b32.xlu1 %v642_v40, %s1499_s23  ;;  %643 = vrot.lane.b32.xlu2 %v630_v37, %s1500_s24  ;;  %s1926_s23 = smov %s1925_s18 }
 0x161   : > { %651 = vrot.lane.b32.xlu0 %v642_v40, %s1500_s24 }
 0x167   : > { %692 = vperm.xlu2 %1361, %v684_v41   ;;  %687 = vperm.xlu1 %1362, %v683_v45  }
 0x169   : > { %782 = vperm.xlu0 %1363, %v776_v7  }
 0x16f   : > { %792 = vperm.xlu2 %1361, %v778_v42   ;;  %787 = vperm.xlu1 %1362, %v777_v46  }
 0x177   : > { %902 = vperm.xlu2 %1361, %v896_v43   ;;  %797 = vperm.xlu1 %1362, %v779_v50  }
 0x17f   : > { %917 = vperm.xlu2 %1361, %v899_v44   ;;  %912 = vperm.xlu1 %1362, %v898_v56  }
 0x1a9   : > { %v669_v47 = vpop.permute.xlu2 %668 }
 0x1b1   : > { %v650_v54 = vpop.permute.xlu2 %649 }
 0x1b9   : > { %v644_v62 = vpop.permute.xlu2 %643 }
 0x1bb   : > { %v665_v48 = vpop.permute.xlu0 %664 }
 0x1c1   : > { %v667_v49 = vpop.permute.xlu1 %666  ;;  %v693_v10 = vpop.permute.xlu2 %692 }
 0x1c2   : > { %v674_v51 = vsel %vm672_vm4, %v665_v48, %v667_v49  ;;  %v675_v52 = vsel %vm672_vm4, %v667_v49, %v669_v47 }
 0x1c3   : > { %723 = vmatpush.bf16.msrb.mxu2 %v674_v51  ;;  %737 = vmatpush.bf16.msrb.mxu3 %v675_v52  ;;  %v646_v53 = vpop.permute.xlu0 %645 }
 0x1c4   : > { %v654_v63 = vsel %vm653_vm5, %v644_v62, %v646_v53 }
 0x1c9   : > { %v648_v55 = vpop.permute.xlu1 %647 }
 0x1ca   : > { %v655_v57 = vsel %vm653_vm5, %v646_v53, %v648_v55  ;;  %v656_v58 = vsel %vm653_vm5, %v648_v55, %v650_v54  ;;  %v1804_v53 = vpop.permute.xlu2 %792 }
 0x1cb   : > { %724 = vmatpush.bf16.msrb.mxu2 %v655_v57  ;;  %738 = vmatpush.bf16.msrb.mxu3 %v656_v58  ;;  %v663_v59 = vpop.permute.xlu0 %662 }
 0x1cc   : > { %v673_v60 = vsel %vm672_vm4, %v663_v59, %v665_v48 }
 0x1cd   : > { %709 = vmatpush.bf16.msrb.mxu1 %v673_v60 }
 0x1cf   : > { %725 = vmatpush.bf16.msrb.mxu2 %v1704_v13  ;;  %739 = vmatpush.bf16.msrb.mxu3 %v632_v28 }
 0x1d1   : > { %v671_v0 = vpop.permute.xlu1 %670  ;;  %710 = vmatpush.bf16.msrb.mxu1 %v654_v63 }
 0x1d2   : > { %v676_v1 = vsel %vm672_vm4, %v669_v47, %v671_v0  ;;  %1225 = vmatmul.msk.bf16.vlgmr.msrb.gmra.mxu2 %vm700_vm6, %v1268_v61  ;;  %1226 = vmatmul.msk.bf16.vlgmr.msrb.gmra.mxu3 %vm700_vm6, %v1268_v61  ;;  %v903_v60 = vpop.permute.xlu2 %902 }
 0x1d3   : > { %751 = vmatpush.bf16.msra.mxu0 %v676_v1  ;;  %v652_v2 = vpop.permute.xlu0 %651 }
 0x1d4   : > { %v657_v3 = vsel %vm653_vm5, %v650_v54, %v652_v2 }
 0x1d5   : > { %711 = vmatpush.bf16.msrb.mxu1 %v630_v37 }
 0x1d7   : > { %752 = vmatpush.bf16.msra.mxu0 %v657_v3 }
 0x1d8   : > { %1224 = vmatmul.msk.bf16.vlgmr.msrb.gmra.mxu1 %vm700_vm6, %v1268_v61 }
 0x1d9   : > { %v688_v8 = vpop.permute.xlu1 %687 }
 0x1db   : > { %753 = vmatpush.bf16.msra.mxu0 %v1708_v27  ;;  %v783_v59 = vpop.permute.xlu0 %782 }
 0x1de   : > { %1227 = vmatmul.msk.bf16.vlgmr.msra.gmra.mxu0 %vm700_vm6, %v1268_v61 }
 0x1e1   : > { %v788_v56 = vpop.permute.xlu1 %787 }
 0x255   : > { %v741_v4 = vpop.f32.mrf.mxu3  ;;  %v713_v5 = vpop.f32.mrf.mxu1 }
 0x256   : > { %v727_v6 = vpop.f32.mrf.mxu2  ;;  %v742_v11 = vadd.f32 %v741_v4, %v688_v8  ;;  %v714_v12 = vadd.f32 %v713_v5, %v688_v8 }
 0x257   : > { %v728_v13 = vadd.f32 %v727_v6, %v688_v8 }
 0x258   : > { %v762_v24 = vmax.f32 %v742_v11, 0.0  ;;  %v760_v25 = vmax.f32 %v714_v12, 0.0 }
 0x259   : > { %v761_v28 = vmax.f32 %v728_v13, 0.0 }
 0x25b   : > { %v755_v9 = vpop.f32.mrf.mxu0 }
 0x25c   : > { %v756_v30 = vadd.f32 %v755_v9, %v688_v8 }
 0x25d   : > { %v743_v14 = vpop.f32.mrf.mxu3  ;;  %v715_v15 = vpop.f32.mrf.mxu1 }
 0x25e   : > { %v744_v18 = vadd.f32 %v743_v14, %v693_v10  ;;  %v716_v19 = vadd.f32 %v715_v15, %v693_v10  ;;  %v729_v20 = vpop.f32.mrf.mxu2  ;;  %v763_v37 = vmax.f32 %v756_v30, 0.0 }
 0x25f   : > { %v730_v21 = vadd.f32 %v729_v20, %v693_v10 }
 0x260   : > { %v766_v26 = vmax.f32 %v744_v18, 0.0  ;;  %v764_v27 = vmax.f32 %v716_v19, 0.0 }
 0x261   : > { %v765_v29 = vmax.f32 %v730_v21, 0.0 }
 0x262   : > { %v770_v31 = vpack.c.bf16 %v766_v26, %v762_v24  ;;  %v768_v32 = vpack.c.bf16 %v764_v27, %v760_v25 }
 0x263   : > { %v769_v33 = vpack.c.bf16 %v765_v29, %v761_v28  ;;  %v757_v34 = vpop.f32.mrf.mxu0 }
 0x264   : > { %v758_v36 = vadd.f32 %v757_v34, %v693_v10  ;;  %823 = vmatpush.bf16.msra.mxu1 %v768_v32  ;;  %861 = vmatpush.bf16.msra.mxu3 %v770_v31  ;;  %v1812_v10 = vpop.permute.xlu1 %797 }
 0x265   : > { %842 = vmatpush.bf16.msra.mxu2 %v769_v33 }
 0x266   : > { %v767_v38 = vmax.f32 %v758_v36, 0.0 }
 0x267   : > { %1236 = vmatmul.msk.bf16.vlgmr.msra.gmra.mxu1 %vm512_vm1, %v1269_v35  ;;  %1240 = vmatmul.msk.bf16.vlgmr.msra.gmra.mxu3 %vm512_vm1, %v1269_v35 }
 0x268   : > { %985 = vmatpush.bf16.msrb.mxu3 %v1659_v16  ;;  %947 = vmatpush.bf16.msrb.mxu1 %v1661_v17  ;;  %v771_v39 = vpack.c.bf16 %v767_v38, %v763_v37  ;;  %v1270_v16 = vld [vmem:[%s1924_s26 + $0x8] sm:$0xff] }
 0x269   : > { %966 = vmatpush.bf16.msrb.mxu2 %v1667_v23  ;;  %v897_v17 = vld [vmem:[%s1896_s9 + $0x8] sm:$0xff] }
 0x26a   : > { %1238 = vmatmul.msk.bf16.vlgmr.msra.gmra.mxu2 %vm512_vm1, %v1269_v35  ;;  %880 = vmatpush.bf16.msrb.mxu0 %v771_v39  ;;  %v1272_v23 = vld [vmem:[%s1926_s23 + $0x8] sm:$0xff] }
 0x26b   : > { %907 = vperm.xlu0 %1363, %v897_v17  }
 0x26c   : > { %v913_v17 = vpop.permute.xlu1 %912 }
 0x26d   : > { %1242 = vmatmul.msk.bf16.vlgmr.msrb.gmra.mxu0 %vm512_vm1, %v1269_v35 }
 0x26e   : > { %1004 = vmatpush.bf16.msra.mxu0 %v1665_v22  ;;  %v1271_v22 = vld [vmem:[%s1925_s18] sm:$0xff]  ;;  %s1410_s18 = scalar_lea.hbm %s1409_s15, 64 }
 0x26f   : > { %p1411_p7 = scmp.ne.s32.totalorder %s1409_s15, %s1410_s18  ;;  %p1416_p13 = scmp.lt.s32.totalorder %s1414_s8, %s1410_s18 }
 0x271   : > { %p1412_p8 = pnand %p1411_p7, %p1624_p9  ;;  %p1417_p0 = por %p1416_p13, %p1415_p11 }
 0x273   : > { %p1413_p10 = pneg %p1412_p8 }
 0x275   : > { %p1418_p1 = pnand %p1417_p0, %p1413_p10 }
 0x277   : > { %1237 = vmatmul.msk.bf16.gmra.mxu1 %vm512_vm1, %v1270_v16  ;;  %1241 = vmatmul.msk.bf16.gmra.mxu3 %vm512_vm1, %v1270_v16 }
 0x27a   : > { %1239 = vmatmul.msk.bf16.gmra.mxu2 %vm512_vm1, %v1270_v16 }
 0x27d   : > { %1243 = vmatmul.msk.bf16.gmra.mxu0 %vm512_vm1, %v1270_v16 }
 0x287   : > { %1252 = vmatmul.msk.bf16.vlgmr.msrb.gmra.mxu1 %vm512_vm1, %v1271_v22  ;;  %1256 = vmatmul.msk.bf16.vlgmr.msrb.gmra.mxu3 %vm512_vm1, %v1271_v22 }
 0x28a   : > { %1254 = vmatmul.msk.bf16.vlgmr.msrb.gmra.mxu2 %vm512_vm1, %v1271_v22 }
 0x28d   : > { %1258 = vmatmul.msk.bf16.vlgmr.msra.gmra.mxu0 %vm512_vm1, %v1271_v22 }
 0x297   : > { %1253 = vmatmul.msk.bf16.gmra.mxu1 %vm512_vm1, %v1272_v23  ;;  %1257 = vmatmul.msk.bf16.gmra.mxu3 %vm512_vm1, %v1272_v23 }
 0x29a   : > { %1255 = vmatmul.msk.bf16.gmra.mxu2 %vm512_vm1, %v1272_v23 }
 0x29d   : > { %1259 = vmatmul.msk.bf16.gmra.mxu0 %vm512_vm1, %v1272_v23 }
 0x2dd   : > { %v908_v13 = vpop.permute.xlu0 %907 }
 0x2e4   : > { %v825_v40 = vpop.f32.mrf.mxu1 }
 0x2e5   : > { %v826_v62 = vadd.f32 %v825_v40, %v783_v59 }
 0x2ea   : > { %v863_v41 = vpop.f32.mrf.mxu3  ;;  %v882_v42 = vpop.f32.mrf.mxu0 }
 0x2eb   : > { %v864_v2 = vadd.f32 %v863_v41, %v783_v59  ;;  %v883_v4 = vadd.f32 %v882_v42, %v783_v59 }
 0x2ec   : > { %v827_v44 = vpop.f32.mrf.mxu1 }
 0x2ed   : > { %v844_v43 = vpop.f32.mrf.mxu2  ;;  %v828_v25 = vadd.f32 %v827_v44, %v788_v56 }
 0x2ee   : > { %v845_v7 = vadd.f32 %v844_v43, %v783_v59 }
 0x2f2   : > { %v865_v45 = vpop.f32.mrf.mxu3  ;;  %v884_v46 = vpop.f32.mrf.mxu0 }
 0x2f3   : > { %v866_v29 = vadd.f32 %v865_v45, %v788_v56  ;;  %v885_v30 = vadd.f32 %v884_v46, %v788_v56 }
 0x2f4   : > { %v1794_v48 = vpop.f32.mrf.mxu1 }
 0x2f5   : > { %v846_v47 = vpop.f32.mrf.mxu2  ;;  %v831_v44 = vadd.f32 %v1794_v48, %v1804_v53 }
 0x2f6   : > { %v847_v34 = vadd.f32 %v846_v47, %v788_v56 }
 0x2fa   : > { %v1796_v49 = vpop.f32.mrf.mxu3  ;;  %v1798_v50 = vpop.f32.mrf.mxu0 }
 0x2fb   : > { %v869_v56 = vadd.f32 %v1796_v49, %v1804_v53  ;;  %v918_v49 = vpop.permute.xlu2 %917 }
 0x2fc   : > { %v1802_v52 = vpop.f32.mrf.mxu1 }
 0x2fd   : > { %v1800_v51 = vpop.f32.mrf.mxu2 }
 0x302   : > { %v1806_v54 = vpop.f32.mrf.mxu3  ;;  %v1808_v55 = vpop.f32.mrf.mxu0 }
 0x304   : > { %v949_v58 = vpop.f32.mrf.mxu1 }
 0x305   : > { %v1810_v57 = vpop.f32.mrf.mxu2  ;;  %v950_v61 = vadd.f32 %v949_v58, %v903_v60  ;;  %v888_v58 = vadd.f32 %v1798_v50, %v1804_v53 }
 0x307   : > { %v1016_v6 = vadd.f32 %v950_v61, %v826_v62  ;;  %v850_v62 = vadd.f32 %v1800_v51, %v1804_v53  ;;  %v833_v51 = vadd.f32 %v1802_v52, %v1812_v10  ;;  %v852_v52 = vadd.f32 %v1810_v57, %v1812_v10 }
 0x309   : > { %v1032_v19 = vmax.f32 %v1016_v6, 0.0 }
 0x30a   : > { %v987_v63 = vpop.f32.mrf.mxu3  ;;  %v1006_v0 = vpop.f32.mrf.mxu0 }
 0x30b   : > { %v988_v3 = vadd.f32 %v987_v63, %v903_v60  ;;  %v1007_v5 = vadd.f32 %v1006_v0, %v903_v60 }
 0x30c   : > { %v951_v9 = vpop.f32.mrf.mxu1 }
 0x30d   : > { %v968_v1 = vpop.f32.mrf.mxu2  ;;  %v1018_v11 = vadd.f32 %v988_v3, %v864_v2  ;;  %v1019_v12 = vadd.f32 %v1007_v5, %v883_v4  ;;  %v952_v21 = vadd.f32 %v951_v9, %v908_v13 }
 0x30e   : > { %v969_v8 = vadd.f32 %v968_v1, %v903_v60 }
 0x30f   : > { %v1034_v15 = vmax.f32 %v1018_v11, 0.0  ;;  %v1035_v18 = vmax.f32 %v1019_v12, 0.0  ;;  %v1020_v35 = vadd.f32 %v952_v21, %v828_v25  ;;  %v871_v12 = vadd.f32 %v1806_v54, %v1812_v10 }
 0x310   : > { %v1017_v14 = vadd.f32 %v969_v8, %v845_v7 }
 0x311   : > { %v1049_v24 = vpack.c.bf16 %v1035_v18, %v1034_v15  ;;  %v1036_v40 = vmax.f32 %v1020_v35, 0.0 }
 0x312   : > { %v1033_v20 = vmax.f32 %v1017_v14, 0.0  ;;  %v989_v27 = vpop.f32.mrf.mxu3  ;;  %v1008_v28 = vpop.f32.mrf.mxu0 }
 0x313   : > { %1057 = vst [vmem:[%s1816_s28 + $0x8] sm:$0xff] %v1049_v24  ;;  %v990_v32 = vadd.f32 %v989_v27, %v908_v13  ;;  %v1009_v33 = vadd.f32 %v1008_v28, %v908_v13 }
 0x314   : > { %v1048_v26 = vpack.c.bf16 %v1033_v20, %v1032_v19  ;;  %v954_v37 = vpop.f32.mrf.mxu1 }
 0x315   : > { %v970_v31 = vpop.f32.mrf.mxu2  ;;  %v1022_v38 = vadd.f32 %v990_v32, %v866_v29  ;;  %v1023_v39 = vadd.f32 %v1009_v33, %v885_v30  ;;  %v955_v42 = vadd.f32 %v954_v37, %v913_v17 }
 0x316   : > { %1056 = vst [vmem:[%s1816_s28] sm:$0xff] %v1048_v26  ;;  %v971_v36 = vadd.f32 %v970_v31, %v908_v13  ;;  %v890_v13 = vadd.f32 %v1808_v55, %v1812_v10 }
 0x317   : > { %v1038_v22 = vmax.f32 %v1022_v38, 0.0  ;;  %v1039_v23 = vmax.f32 %v1023_v39, 0.0  ;;  %v1024_v48 = vadd.f32 %v955_v42, %v831_v44 }
 0x318   : > { %v1021_v16 = vadd.f32 %v971_v36, %v847_v34 }
 0x319   : > { %v1051_v43 = vpack.c.bf16 %v1039_v23, %v1038_v22  ;;  %v1040_v50 = vmax.f32 %v1024_v48, 0.0 }
 0x31a   : > { %v1037_v41 = vmax.f32 %v1021_v16, 0.0  ;;  %v992_v46 = vpop.f32.mrf.mxu3  ;;  %v1011_v47 = vpop.f32.mrf.mxu0 }
 0x31b   : > { %1059 = vst [vmem:[%s1816_s28 + $0x18] sm:$0xff] %v1051_v43  ;;  %v993_v60 = vadd.f32 %v992_v46, %v913_v17  ;;  %v1012_v61 = vadd.f32 %v1011_v47, %v913_v17 }
 0x31c   : > { %v1050_v45 = vpack.c.bf16 %v1037_v41, %v1036_v40  ;;  %v956_v2 = vpop.f32.mrf.mxu1 }
 0x31d   : > { %v973_v59 = vpop.f32.mrf.mxu2  ;;  %v1026_v0 = vadd.f32 %v993_v60, %v869_v56  ;;  %v1027_v1 = vadd.f32 %v1012_v61, %v888_v58  ;;  %v957_v7 = vadd.f32 %v956_v2, %v918_v49 }
 0x31e   : > { %1058 = vst [vmem:[%s1816_s28 + $0x10] sm:$0xff] %v1050_v45  ;;  %v974_v63 = vadd.f32 %v973_v59, %v913_v17 }
 0x31f   : > { %v1042_v4 = vmax.f32 %v1026_v0, 0.0  ;;  %v1043_v5 = vmax.f32 %v1027_v1, 0.0  ;;  %v1028_v19 = vadd.f32 %v957_v7, %v833_v51 }
 0x320   : > { %v1025_v3 = vadd.f32 %v974_v63, %v850_v62 }
 0x321   : > { %v1053_v8 = vpack.c.bf16 %v1043_v5, %v1042_v4  ;;  %v1044_v26 = vmax.f32 %v1028_v19, 0.0 }
 0x322   : > { %v1041_v6 = vmax.f32 %v1025_v3, 0.0  ;;  %v994_v9 = vpop.f32.mrf.mxu3  ;;  %v1013_v11 = vpop.f32.mrf.mxu0 }
 0x323   : > { %1061 = vst [vmem:[%s1816_s28 + $0x28] sm:$0xff] %v1053_v8  ;;  %v995_v15 = vadd.f32 %v994_v9, %v918_v49  ;;  %v1014_v18 = vadd.f32 %v1013_v11, %v918_v49 }
 0x324   : > { %v1052_v53 = vpack.c.bf16 %v1041_v6, %v1040_v50 }
 0x325   : > { %v975_v14 = vpop.f32.mrf.mxu2  ;;  %v1030_v54 = vadd.f32 %v995_v15, %v871_v12  ;;  %v1031_v55 = vadd.f32 %v1014_v18, %v890_v13 }
 0x326   : > { %1060 = vst [vmem:[%s1816_s28 + $0x20] sm:$0xff] %v1052_v53  ;;  %v976_v20 = vadd.f32 %v975_v14, %v918_v49 }
 0x327   : > { %v1046_v24 = vmax.f32 %v1030_v54, 0.0  ;;  %v1047_v25 = vmax.f32 %v1031_v55, 0.0 }
 0x328   : > { %v1029_v21 = vadd.f32 %v976_v20, %v852_v52 }
 0x329   : > { %v1055_v28 = vpack.c.bf16 %v1047_v25, %v1046_v24 }
 0x32a   : > { %v1045_v27 = vmax.f32 %v1029_v21, 0.0 }
 0x32b   : > { %1063 = vst [vmem:[%s1816_s28 + $0x38] sm:$0xff] %v1055_v28 }
 0x32c   : > { %v1054_v57 = vpack.c.bf16 %v1045_v27, %v1044_v26 }
 0x32e   : > { %1062 = vst [vmem:[%s1816_s28 + $0x30] sm:$0xff] %v1054_v57 }
 0x32f   : > { %1421 = shalt.err (!%p1418_p1)
}
 0x330   : > { %s1501_s6 = smov 256   ;;  %s1502_s28 = smov 1024  }
 0x331   : > { %s1503_s17 = smov 16  }
 0x332   : > { %1275 = dma.vmem_to_hbm [thread:$0]  (%p1624_p9), %s1080_s11, 1024, %s1082_s25, %s1065_s13, %s1501_s6, %s1502_s28, %s1503_s17  }
 0x333 PF: > { %s1929_s12 = sld [smem:[#allocation8_spill]]  ;;  %p1286_p2 = scmp.ge.s32.totalorder %s1492_s20, 2 }
 0x335   : > { %p1282_p4 = pnand %p1286_p2, %p1630_p12 }
 0x337   : > { %p1283_p3 = pneg %p1282_p4 }
 0x339   : > { %s1096_s30 = sand.u32 1, %s1929_s12  }
 0x33a   : > { %s1097_s15 = scalar_lea.sflag [#allocation4], %s1096_s30 }
 0x33b   : > { %1459 = dma.done.wait (%p1283_p3), %s1097_s15, 1024  }
 0x33c   : > { %1461 = vsyncadd (%p1283_p3), %s1097_s15, 4294966272  ;;  %s26_s20 = sadd.s32 1, %s1492_s20   ;;  %s1931_s18 = sld [smem:[#allocation9_spill]] }
 0x33d   : > { %p23_p5 = scmp.ge.s32.totalorder %s26_s20, 10   ;;  %s1932_s15 = sld [smem:[#allocation15_spill]] }
 0x33e   : > { %s1933_s16 = sld [smem:[#allocation10_spill]]  ;;  %s1936_s13 = smov %s1468_s14 }
 0x33f   : > { %s1934_s11 = sld [smem:[#allocation11_spill]]  ;;  %s1938_s17 = smov %s1488_s19 }
 0x340   : > { %s1935_s25 = sld [smem:[#allocation12_spill]] }
 0x342   : > { %s1937_s14 = smov %s1931_s18  ;;  %25 = sbr.rel (!%p23_p5) target bundleno = 11 (0xb), region = 108 }
 0x345   : > { %s1939_s18 = smov %s1934_s11 }
 0x346   : > { %s1940_s19 = smov %s1935_s25 }
 0x347   :  { %1103 = vsyncpa [#allocation3], 1 }
 0x348   :  { %1105 = vsyncpa [#allocation3 + $0x1], 1 }
 0x349   :  { %1106 = vsyncpa [#allocation4], 1 }
 0x34a   :  { %1108 = vsyncpa [#allocation4 + $0x1], 1 }

</bundles_post_ra>
